<compile_context>
chip_gen: v5e
topology: v5e:2x2
jax: 0.10.0
libtpu: 0.0.40
codegen_flags: <defaults>
</compile_context>

<pallas_src>
import jax
import jax.numpy as jnp
from jax.experimental import pallas as pl
from jax.experimental.pallas import tpu as pltpu


_NT_DIMS = (((1,), (1,)), ((), ()))   # contract last dims of both operands: a @ b.T


def _make_kernel(n_parts, approx_sigmoid):
    """Kernel for sigmoid(MLP(concat(parts, axis=1))) with the concat fused into layer 1."""

    def kernel(*refs):
        emb_refs = refs[:n_parts]                      # each (tile_n, E)
        w1_refs = refs[n_parts:2 * n_parts]            # each (E, E)
        b1_ref, w2_ref, b2_ref, w3_ref, b3_ref, o_ref = refs[2 * n_parts:]

        # Layer 1: sum of per-part matmuls == concat(parts, axis=1) @ w1.
        h = jnp.dot(emb_refs[0][...], w1_refs[0][...],
                    preferred_element_type=jnp.float32)
        for p in range(1, n_parts):
            h = h + jnp.dot(emb_refs[p][...], w1_refs[p][...],
                            preferred_element_type=jnp.float32)
        h = jnp.maximum(h + b1_ref[...], 0.0)          # ReLU

        # Layer 2.
        h = jnp.dot(h, w2_ref[...], preferred_element_type=jnp.float32) + b2_ref[...]
        h = jnp.maximum(h, 0.0)                        # ReLU

        # Layer 3: (1, E) x (tile_n, E)^T -> (1, tile_n); result is lane-dense
        # (nodes on the lane axis), so the store is a full-width vst, not vst.msk.
        y = jax.lax.dot_general(w3_ref[...], h, _NT_DIMS,
                                preferred_element_type=jnp.float32)
        y = y + b3_ref[0]                              # scalar bias from SMEM

        # sigmoid: exp and (approx) reciprocal both go to the EUP slot.
        s = pl.reciprocal(1.0 + jnp.exp(-y), approx=approx_sigmoid)
        o_ref[...] = s[None].astype(o_ref.dtype)       # (1, 1, tile_n)

    return kernel


def _round_up(x, m):
    return ((x + m - 1) // m) * m


def maxsat_readout(emb_parts, params, *, tile_n=4096, approx_sigmoid=True):
    """sigmoid(MLP(concat(emb_parts, axis=1))).squeeze(-1), concat fused into layer 1.

    emb_parts: list of (N, E) node embeddings (1 part for vcg/vig, 2 for lcg/lig);
               f32 or bf16 (bf16 halves HBM traffic — cast upstream, not here).
    params: w1 (n_parts*E, E), b1 (1, E), w2 (E, E), b2 (1, E), w3 (E, 1), b3 (1, 1)
    returns: (N,) float32
    """
    n_parts = len(emb_parts)
    N, E = emb_parts[0].shape
    assert params["w1"].shape == (n_parts * E, E)

    # Tile selection:
    #   * cap tile_n (VMEM: (tile_n, 32) tiles are lane-padded to 128 lanes = 4x bytes),
    #   * keep >= 2 balanced grid steps whenever N > 128 so v7x's two TensorCores both
    #     get work (grid axis is "parallel"); no-op on single-TC v5e/v6e,
    #   * shrink for tiny graphs.
    # No input padding: Pallas handles the ragged last block; rows >= N produce garbage
    # that the [:N] slice below drops (every output row depends only on its own input row).
    tile_cap = max(128, (tile_n // 128) * 128)
    tile_n = max(128, min(tile_cap, _round_up((N + 1) // 2, 128)))
    num_tiles = pl.cdiv(N, tile_n)

    # Split layer-1 weights per embedding part:
    #   concat(parts, axis=1) @ w1 == sum_p parts[p] @ w1[p*E:(p+1)*E, :]
    w1_parts = [params["w1"][p * E:(p + 1) * E, :] for p in range(n_parts)]
    w3_row = params["w3"].T                 # (1, E): used as w3_row @ h^T
    b3_flat = params["b3"].reshape((1,))    # SMEM scalar

    full = lambda i: (0, 0)
    in_specs = (
        [pl.BlockSpec((tile_n, E), lambda i: (i, 0))] * n_parts      # node-embedding tiles
        + [pl.BlockSpec((E, E), full)] * n_parts                     # w1 parts (resident)
        + [pl.BlockSpec((1, E), full),                               # b1
           pl.BlockSpec((E, E), full),                               # w2
           pl.BlockSpec((1, E), full),                               # b2
           pl.BlockSpec((1, E), full),                               # w3 row
           pl.BlockSpec(memory_space=pltpu.MemorySpace.SMEM)]        # b3 scalar
    )

    out = pl.pallas_call(
        _make_kernel(n_parts, approx_sigmoid),
        out_shape=jax.ShapeDtypeStruct((num_tiles, 1, tile_n), jnp.float32),
        grid_spec=pltpu.PrefetchScalarGridSpec(
            num_scalar_prefetch=0,
            grid=(num_tiles,),
            in_specs=in_specs,
            out_specs=pl.BlockSpec((1, 1, tile_n), lambda i: (i, 0, 0)),
        ),
        compiler_params=pltpu.CompilerParams(
            dimension_semantics=("parallel",),      # v7x: shard grid steps across both TCs
            # Lane-padded double-buffered emb tiles + h temporaries peak ~16 MiB at
            # tile_n=4096 (lcg); 48 MiB clears v5e's 16 MiB scoped default and stays well
            # under v7x's 64 MiB physical VMEM.
            vmem_limit_bytes=48 * 1024 * 1024),
    )(*emb_parts, *w1_parts, params["b1"], params["w2"], params["b2"],
      w3_row, b3_flat)

    return out.reshape(-1)[:N]   # lane-dense rows -> flat node order; drop ragged tail


def make_params(key, in_dim, emb_size):
    """Deterministic synthetic parameter init (shapes of MLP(in, E, 1, num_layer=3))."""
    ks = jax.random.split(key, 6)
    scale = 0.1
    return {
        "w1": scale * jax.random.normal(ks[0], (in_dim, emb_size), jnp.float32),
        "b1": scale * jax.random.normal(ks[1], (1, emb_size), jnp.float32),
        "w2": scale * jax.random.normal(ks[2], (emb_size, emb_size), jnp.float32),
        "b2": scale * jax.random.normal(ks[3], (1, emb_size), jnp.float32),
        "w3": scale * jax.random.normal(ks[4], (emb_size, 1), jnp.float32),
        "b3": scale * jax.random.normal(ks[5], (1, 1), jnp.float32),
    }


def maxsat_readout_module(batch, params, graph_type, *, tile_n=4096, approx_sigmoid=True):
    """Mirrors MaxSATReadout.forward on a dict-of-arrays 'graph'."""
    g = batch["g"]
    if graph_type in ("lcg", "lig"):
        # torch.cat([pos, neg], dim=1) is fused into the kernel's first matmul.
        emb_parts = [g["pos_l_emb"], g["neg_l_emb"]]
    else:
        emb_parts = [g["v_emb"]]
    batch = dict(batch)
    batch["maxsat"] = maxsat_readout(emb_parts, params, tile_n=tile_n,
                                     approx_sigmoid=approx_sigmoid)
    return batch


def _reference(v_emb, p):
    h = jnp.maximum(v_emb @ p["w1"] + p["b1"], 0.0)
    h = jnp.maximum(h @ p["w2"] + p["b2"], 0.0)
    y = h @ p["w3"] + p["b3"]
    return jax.nn.sigmoid(y)[:, 0]


if __name__ == "__main__":
    emb_size = 32
    num_nodes = 16

    key = jax.random.PRNGKey(0)
    k_pos, k_neg, k_v, k_big, k_par_lcg, k_par_vcg = jax.random.split(key, 6)

    # --- lcg / lig path: v_emb = concat([pos, neg], dim=1), in_dim = 2*E ---
    batch_lcg = {"g": {
        "pos_l_emb": jax.random.normal(k_pos, (num_nodes, emb_size), jnp.float32),
        "neg_l_emb": jax.random.normal(k_neg, (num_nodes, emb_size), jnp.float32),
    }}
    params_lcg = make_params(k_par_lcg, 2 * emb_size, emb_size)
    v_emb_cat = jnp.concatenate(
        [batch_lcg["g"]["pos_l_emb"], batch_lcg["g"]["neg_l_emb"]], axis=1)
    ref_lcg = jax.block_until_ready(_reference(v_emb_cat, params_lcg))

    # Strict math check (exact reciprocal), 1e-5.
    out_lcg_exact = jax.block_until_ready(
        maxsat_readout_module(batch_lcg, params_lcg, "lcg",
                              approx_sigmoid=False)["maxsat"])
    assert out_lcg_exact.shape == (num_nodes,)
    assert jnp.allclose(out_lcg_exact, ref_lcg, atol=1e-5, rtol=1e-5)

    # Default (approx EUP reciprocal) path: loosened tolerance per review.
    out_lcg = jax.block_until_ready(
        maxsat_readout_module(batch_lcg, params_lcg, "lcg")["maxsat"])
    assert jnp.allclose(out_lcg, ref_lcg, atol=2e-3, rtol=2e-3)

    # --- vcg / vig path: v_emb used directly, in_dim = E ---
    batch_vcg = {"g": {
        "v_emb": jax.random.normal(k_v, (num_nodes, emb_size), jnp.float32),
    }}
    params_vcg = make_params(k_par_vcg, emb_size, emb_size)
    out_vcg = jax.block_until_ready(
        maxsat_readout_module(batch_vcg, params_vcg, "vcg")["maxsat"])
    ref_vcg = jax.block_until_ready(_reference(batch_vcg["g"]["v_emb"], params_vcg))
    assert out_vcg.shape == (num_nodes,)
    assert jnp.allclose(out_vcg, ref_vcg, atol=2e-3, rtol=2e-3)

    # --- multi-tile + ragged last block (no input padding): N not a multiple of tile_n ---
    n_big = 300
    kb1, kb2 = jax.random.split(k_big)
    batch_big = {"g": {
        "pos_l_emb": jax.random.normal(kb1, (n_big, emb_size), jnp.float32),
        "neg_l_emb": jax.random.normal(kb2, (n_big, emb_size), jnp.float32),
    }}
    out_big = jax.block_until_ready(
        maxsat_readout_module(batch_big, params_lcg, "lcg")["maxsat"])
    ref_big = jax.block_until_ready(_reference(
        jnp.concatenate([batch_big["g"]["pos_l_emb"], batch_big["g"]["neg_l_emb"]],
                        axis=1), params_lcg))
    assert out_big.shape == (n_big,)
    assert jnp.allclose(out_big, ref_big, atol=2e-3, rtol=2e-3)

    print("KERNEL_OK")
</pallas_src>

<mosaic_0001>
module attributes {stable_mosaic.version = 11 : i64} {
  func.func @kernel(%arg0: i32, %arg1: memref<128x32xf32, #tpu.memory_space<vmem>>, %arg2: memref<128x32xf32, #tpu.memory_space<vmem>>, %arg3: memref<32x32xf32, #tpu.memory_space<vmem>>, %arg4: memref<32x32xf32, #tpu.memory_space<vmem>>, %arg5: memref<1x32xf32, #tpu.memory_space<vmem>>, %arg6: memref<32x32xf32, #tpu.memory_space<vmem>>, %arg7: memref<1x32xf32, #tpu.memory_space<vmem>>, %arg8: memref<1x32xf32, #tpu.memory_space<vmem>>, %arg9: memref<1xf32, #tpu.memory_space<smem>>, %arg10: memref<1x1x128xf32, #tpu.memory_space<vmem>>) attributes {dimension_semantics = [#tpu.dimension_semantics<parallel>], iteration_bounds = array<i64: 1>, scalar_prefetch = 0 : i64, scratch_operands = 0 : i64, tpu.core_type = #tpu.core_type<tc>, window_params = [{transform_indices = @transform_0, window_bounds = array<i64: 128, 32>}, {transform_indices = @transform_1, window_bounds = array<i64: 128, 32>}, {pipeline_mode = #tpu.pipeline_mode<synchronous>, transform_indices = @transform_2, window_bounds = array<i64: 32, 32>}, {pipeline_mode = #tpu.pipeline_mode<synchronous>, transform_indices = @transform_3, window_bounds = array<i64: 32, 32>}, {pipeline_mode = #tpu.pipeline_mode<synchronous>, transform_indices = @transform_4, window_bounds = array<i64: 1, 32>}, {pipeline_mode = #tpu.pipeline_mode<synchronous>, transform_indices = @transform_5, window_bounds = array<i64: 32, 32>}, {pipeline_mode = #tpu.pipeline_mode<synchronous>, transform_indices = @transform_6, window_bounds = array<i64: 1, 32>}, {pipeline_mode = #tpu.pipeline_mode<synchronous>, transform_indices = @transform_7, window_bounds = array<i64: 1, 32>}, {transform_indices = @transform_8, window_bounds = array<i64: 1>}, {transform_indices = @transform_9, window_bounds = array<i64: 1, 1, 128>}]} {
    %c0 = arith.constant 0 : index
    %c0_0 = arith.constant 0 : index
    %0 = vector.load %arg1[%c0, %c0_0] : memref<128x32xf32, #tpu.memory_space<vmem>>, vector<128x32xf32>
    %c0_1 = arith.constant 0 : index
    %c0_2 = arith.constant 0 : index
    %1 = vector.load %arg3[%c0_1, %c0_2] : memref<32x32xf32, #tpu.memory_space<vmem>>, vector<32x32xf32>
    %cst = arith.constant dense<0.000000e+00> : vector<128x32xf32>
    %2 = tpu.matmul %0, %1, %cst {dimension_numbers = #tpu.dot_dimension_numbers<[1], [0], [0], [1], [0, 0, 1, 1], [], []>} : vector<128x32xf32>, vector<32x32xf32>, vector<128x32xf32> -> vector<128x32xf32>
    %c0_3 = arith.constant 0 : index
    %c0_4 = arith.constant 0 : index
    %3 = vector.load %arg2[%c0_3, %c0_4] : memref<128x32xf32, #tpu.memory_space<vmem>>, vector<128x32xf32>
    %c0_5 = arith.constant 0 : index
    %c0_6 = arith.constant 0 : index
    %4 = vector.load %arg4[%c0_5, %c0_6] : memref<32x32xf32, #tpu.memory_space<vmem>>, vector<32x32xf32>
    %cst_7 = arith.constant dense<0.000000e+00> : vector<128x32xf32>
    %5 = tpu.matmul %3, %4, %cst_7 {dimension_numbers = #tpu.dot_dimension_numbers<[1], [0], [0], [1], [0, 0, 1, 1], [], []>} : vector<128x32xf32>, vector<32x32xf32>, vector<128x32xf32> -> vector<128x32xf32>
    %6 = arith.addf %2, %5 : vector<128x32xf32>
    %c0_8 = arith.constant 0 : index
    %c0_9 = arith.constant 0 : index
    %7 = vector.load %arg5[%c0_8, %c0_9] : memref<1x32xf32, #tpu.memory_space<vmem>>, vector<1x32xf32>
    %8 = vector.broadcast %7 : vector<1x32xf32> to vector<128x32xf32>
    %9 = arith.addf %6, %8 : vector<128x32xf32>
    %cst_10 = arith.constant 0.000000e+00 : f32
    %10 = vector.broadcast %cst_10 : f32 to vector<128x32xf32>
    %11 = arith.maximumf %9, %10 : vector<128x32xf32>
    %c0_11 = arith.constant 0 : index
    %c0_12 = arith.constant 0 : index
    %12 = vector.load %arg6[%c0_11, %c0_12] : memref<32x32xf32, #tpu.memory_space<vmem>>, vector<32x32xf32>
    %cst_13 = arith.constant dense<0.000000e+00> : vector<128x32xf32>
    %13 = tpu.matmul %11, %12, %cst_13 {dimension_numbers = #tpu.dot_dimension_numbers<[1], [0], [0], [1], [0, 0, 1, 1], [], []>} : vector<128x32xf32>, vector<32x32xf32>, vector<128x32xf32> -> vector<128x32xf32>
    %c0_14 = arith.constant 0 : index
    %c0_15 = arith.constant 0 : index
    %14 = vector.load %arg7[%c0_14, %c0_15] : memref<1x32xf32, #tpu.memory_space<vmem>>, vector<1x32xf32>
    %15 = vector.broadcast %14 : vector<1x32xf32> to vector<128x32xf32>
    %16 = arith.addf %13, %15 : vector<128x32xf32>
    %cst_16 = arith.constant 0.000000e+00 : f32
    %17 = vector.broadcast %cst_16 : f32 to vector<128x32xf32>
    %18 = arith.maximumf %16, %17 : vector<128x32xf32>
    %c0_17 = arith.constant 0 : index
    %c0_18 = arith.constant 0 : index
    %19 = vector.load %arg8[%c0_17, %c0_18] : memref<1x32xf32, #tpu.memory_space<vmem>>, vector<1x32xf32>
    %cst_19 = arith.constant dense<0.000000e+00> : vector<1x128xf32>
    %20 = tpu.matmul %19, %18, %cst_19 {dimension_numbers = #tpu.dot_dimension_numbers<[1], [1], [0], [0], [0, 0, 1, 0], [], []>} : vector<1x32xf32>, vector<128x32xf32>, vector<1x128xf32> -> vector<1x128xf32>
    %c0_20 = arith.constant 0 : index
    %21 = memref.load %arg9[%c0_20] : memref<1xf32, #tpu.memory_space<smem>>
    %22 = vector.broadcast %21 : f32 to vector<1x128xf32>
    %23 = arith.addf %20, %22 : vector<1x128xf32>
    %cst_21 = arith.constant 0.000000e+00 : f32
    %24 = vector.broadcast %cst_21 : f32 to vector<1x128xf32>
    %25 = arith.subf %24, %23 : vector<1x128xf32>
    %26 = math.exp %25 : vector<1x128xf32>
    %cst_22 = arith.constant 1.000000e+00 : f32
    %27 = vector.broadcast %cst_22 : f32 to vector<1x128xf32>
    %28 = arith.addf %27, %26 : vector<1x128xf32>
    %29 = tpu.reciprocal %28 : vector<1x128xf32> -> vector<1x128xf32>
    %30 = vector.shape_cast %29 : vector<1x128xf32> to vector<1x1x128xf32>
    %c0_23 = arith.constant 0 : index
    %c0_24 = arith.constant 0 : index
    %c0_25 = arith.constant 0 : index
    %31 = vector.load %arg10[%c0_23, %c0_24, %c0_25] : memref<1x1x128xf32, #tpu.memory_space<vmem>>, vector<1x1x128xf32>
    tpu.vector_store %arg10[%c0_23, %c0_24, %c0_25], %30 {strides = array<i32>} : memref<1x1x128xf32, #tpu.memory_space<vmem>>, vector<1x1x128xf32>,
    return
  }
  func.func @transform_0(%arg0: i32) -> (i32, i32) {
    %c0_i32 = arith.constant 0 : i32
    %c0_i32_0 = arith.constant 0 : i32
    return %arg0, %c0_i32 : i32, i32
  }
  func.func @transform_1(%arg0: i32) -> (i32, i32) {
    %c0_i32 = arith.constant 0 : i32
    %c0_i32_0 = arith.constant 0 : i32
    return %arg0, %c0_i32 : i32, i32
  }
  func.func @transform_2(%arg0: i32) -> (i32, i32) {
    %c0_i32 = arith.constant 0 : i32
    %c0_i32_0 = arith.constant 0 : i32
    %c0_i32_1 = arith.constant 0 : i32
    return %c0_i32, %c0_i32_0 : i32, i32
  }
  func.func @transform_3(%arg0: i32) -> (i32, i32) {
    %c0_i32 = arith.constant 0 : i32
    %c0_i32_0 = arith.constant 0 : i32
    %c0_i32_1 = arith.constant 0 : i32
    return %c0_i32, %c0_i32_0 : i32, i32
  }
  func.func @transform_4(%arg0: i32) -> (i32, i32) {
    %c0_i32 = arith.constant 0 : i32
    %c0_i32_0 = arith.constant 0 : i32
    %c0_i32_1 = arith.constant 0 : i32
    return %c0_i32, %c0_i32_0 : i32, i32
  }
  func.func @transform_5(%arg0: i32) -> (i32, i32) {
    %c0_i32 = arith.constant 0 : i32
    %c0_i32_0 = arith.constant 0 : i32
    %c0_i32_1 = arith.constant 0 : i32
    return %c0_i32, %c0_i32_0 : i32, i32
  }
  func.func @transform_6(%arg0: i32) -> (i32, i32) {
    %c0_i32 = arith.constant 0 : i32
    %c0_i32_0 = arith.constant 0 : i32
    %c0_i32_1 = arith.constant 0 : i32
    return %c0_i32, %c0_i32_0 : i32, i32
  }
  func.func @transform_7(%arg0: i32) -> (i32, i32) {
    %c0_i32 = arith.constant 0 : i32
    %c0_i32_0 = arith.constant 0 : i32
    %c0_i32_1 = arith.constant 0 : i32
    return %c0_i32, %c0_i32_0 : i32, i32
  }
  func.func @transform_8(%arg0: i32) -> i32 {
    %c0_i32 = arith.constant 0 : i32
    %c0_i32_0 = arith.constant 0 : i32
    return %c0_i32 : i32
  }
  func.func @transform_9(%arg0: i32) -> (i32, i32, i32) {
    %c0_i32 = arith.constant 0 : i32
    %c0_i32_0 = arith.constant 0 : i32
    %c0_i32_1 = arith.constant 0 : i32
    return %arg0, %c0_i32, %c0_i32_0 : i32, i32, i32
  }
}

</mosaic_0001>

<bundles_post_ra>
// kernel: tpu_custom_call.1
= control target key start
LH: loop header
LB: loop body
LE: loop exit
PB: predicated region body
PF: predicated region fallthrough
CT: control target
= control target key end

     0   :  { %15 = vsyncpa [#allocation4], 0  ;;  %s1081_s0 = inlined_call_operand.hbm [shape: f32[16,32], index: 0, kind: input, shape index: {}]   ;;  %s1082_s1 = inlined_call_operand.hbm [shape: f32[16,32], index: 1, kind: input, shape index: {}]   ;;  %s1083_s2 = inlined_call_operand.hbm [shape: f32[32,32], index: 2, kind: input, shape index: {}]   ;;  %s1084_s3 = inlined_call_operand.hbm [shape: f32[32,32], index: 3, kind: input, shape index: {}]   ;;  %s1085_s4 = inlined_call_operand.vmem [shape: f32[1,32], index: 4, kind: input, shape index: {}]   ;;  %s1086_s5 = inlined_call_operand.hbm [shape: f32[32,32], index: 5, kind: input, shape index: {}]   ;;  %s1087_s6 = inlined_call_operand.vmem [shape: f32[1,32], index: 6, kind: input, shape index: {}]   ;;  %s1088_s7 = inlined_call_operand.vmem [shape: f32[1,32], index: 7, kind: input, shape index: {}]   ;;  %s1089_s8 = inlined_call_operand.<no memory space> [shape: f32[1], index: 8, kind: input, shape index: {}]   ;;  %s1090_s9 = inlined_call_operand.hbm [shape: f32[1,1,128], index: 9, kind: output, shape index: {}]  }
   0x1   :  { %16 = vsyncpa [#allocation7], 0 }
   0x2   :  { %17 = vsyncpa [#allocation10], 0 }
   0x3   :  { %18 = vsyncpa [#allocation5], 0 }
   0x4   :  { %22 = vsyncadd [#allocation4], 1792  ;;  %s23_s11 = sshll.u32 %s1081_s0, 4  ;;  %s895_s12 = smov [#allocation3]   ;;  %s24_s11 = int_to_ptr.hbm [resolvable:$true] %s23_s11 }
   0x5   :  { %s25_s13 = sshll.u32 %s895_s12, 4  ;;  %s896_s14 = smov 128   ;;  %s26_s13 = int_to_ptr.vmem [resolvable:$true] %s25_s13 }
   0x6   :  { %s897_s15 = smov 8  }
   0x7   :  { %31 = dma.hbm_to_vmem [thread:$0]  %s24_s11, 256, %s26_s13, [#allocation4], %s896_s14, %s896_s14, %s897_s15  }
   0x8   :  { %35 = vsyncadd [#allocation7], 1792  ;;  %s36_s18 = sshll.u32 %s1082_s1, 4  ;;  %s898_s19 = smov [#allocation6]   ;;  %s37_s18 = int_to_ptr.hbm [resolvable:$true] %s36_s18 }
   0x9   :  { %s38_s20 = sshll.u32 %s898_s19, 4  ;;  %s62_s22 = sshll.u32 %s1084_s3, 4  ;;  %s39_s20 = int_to_ptr.vmem [resolvable:$true] %s38_s20  ;;  %s63_s22 = int_to_ptr.hbm [resolvable:$true] %s62_s22 }
   0xa   :  { %44 = dma.hbm_to_vmem [thread:$0]  %s37_s18, 256, %s39_s20, [#allocation7], %s896_s14, %s896_s14, %s897_s15  }
   0xb   :  { %s899_s23 = smov [#allocation9]   ;;  %s49_s27 = sshll.u32 %s1083_s2, 4  ;;  %s50_s27 = int_to_ptr.hbm [resolvable:$true] %s49_s27 }
   0xc   :  { %s64_s24 = sshll.u32 %s899_s23, 4  ;;  %s77_s3 = sshll.u32 %s1086_s5, 4  ;;  %s65_s24 = int_to_ptr.vmem [resolvable:$true] %s64_s24  ;;  %s78_s3 = int_to_ptr.hbm [resolvable:$true] %s77_s3 }
   0xd   :  { %70 = dma.hbm_to_vmem [thread:$0]  %s63_s22, 512, %s65_s24, [#allocation10], %s896_s14, %s896_s14, %s897_s15  }
   0xe   :  { %s900_s29 = smov [#allocation8]   ;;  %s901_s10 = smov [#allocation11]  }
   0xf   :  { %s51_s30 = sshll.u32 %s900_s29, 4  ;;  %s79_s2 = sshll.u32 %s901_s10, 4  ;;  %s52_s30 = int_to_ptr.vmem [resolvable:$true] %s51_s30  ;;  %s80_s2 = int_to_ptr.vmem [resolvable:$true] %s79_s2 }
  0x10   :  { %57 = dma.hbm_to_vmem [thread:$0]  %s50_s27, 512, %s52_s30, [#allocation7], %s896_s14, %s896_s14, %s897_s15  }
  0x11   :  { %85 = dma.hbm_to_vmem [thread:$0]  %s78_s3, 512, %s80_s2, [#allocation10], %s896_s14, %s896_s14, %s897_s15  }
  0x12   :  { %887 = dma.done.wait [#allocation4], 2048  }
  0x13   :  { %888 = vsyncadd [#allocation4], 4294965248 }
  0x14   :  { %889 = dma.done.wait [#allocation7], 2560  }
  0x15   :  { %890 = vsyncadd [#allocation7], 4294964736 }
  0x16   :  { %891 = dma.done.wait [#allocation10], 1024  }
  0x17   :  { %892 = vsyncadd [#allocation10], 4294966272  ;;  %v151_v0 = vld [vmem:[#allocation9 + $0x18] sm:$0xff]  ;;  %v150_v2 = vld [vmem:[#allocation9 + $0x10] sm:$0xff]  ;;  %vm152_vm0 = vcmask 261120  }
  0x18   :  { %v131_v1 = vld [vmem:[#allocation8 + $0x18] sm:$0xff]  ;;  %213 = vmatpush.msra.mxu0 %v151_v0  ;;  %v130_v3 = vld [vmem:[#allocation8 + $0x10] sm:$0xff]  ;;  %v149_v4 = vld [vmem:[#allocation9 + $0x8] sm:$0xff] }
  0x19   :  { %326 = vmatpush.msra.mxu1 %v131_v1  ;;  %v129_v5 = vld [vmem:[#allocation8 + $0x8] sm:$0xff]  ;;  %v148_v6 = vld [vmem:[#allocation9] sm:$0xff]  ;;  %v134_v12 = vld [vmem:[#allocation6 + $0x10] sm:$0xff] }
  0x1a   :  { %214 = vmatpush.msra.mxu0 %v150_v2  ;;  %v128_v7 = vld [vmem:[#allocation8] sm:$0xff]  ;;  %v133_v10 = vld [vmem:[#allocation6 + $0x8] sm:$0xff]  ;;  %v114_v13 = vld [vmem:[#allocation3 + $0x10] sm:$0xff] }
  0x1b   :  { %327 = vmatpush.msra.mxu1 %v130_v3  ;;  %v132_v8 = vld [vmem:[#allocation6] sm:$0xff]  ;;  %v113_v11 = vld [vmem:[#allocation3 + $0x8] sm:$0xff]  ;;  %v135_v14 = vld [vmem:[#allocation6 + $0x18] sm:$0xff] }
  0x1c   :  { %215 = vmatpush.msra.mxu0 %v149_v4  ;;  %v112_v9 = vld [vmem:[#allocation3] sm:$0xff]  ;;  %v115_v15 = vld [vmem:[#allocation3 + $0x18] sm:$0xff]  ;;  %v137_v18 = vld [vmem:[#allocation6 + $0x28] sm:$0xff] }
  0x1d   :  { %328 = vmatpush.msra.mxu1 %v129_v5  ;;  %v136_v16 = vld [vmem:[#allocation6 + $0x20] sm:$0xff]  ;;  %v117_v19 = vld [vmem:[#allocation3 + $0x28] sm:$0xff]  ;;  %v138_v20 = vld [vmem:[#allocation6 + $0x30] sm:$0xff] }
  0x1e   :  { %216 = vmatpush.msra.mxu0 %v148_v6  ;;  %v116_v17 = vld [vmem:[#allocation3 + $0x20] sm:$0xff]  ;;  %v118_v21 = vld [vmem:[#allocation3 + $0x30] sm:$0xff]  ;;  %v139_v22 = vld [vmem:[#allocation6 + $0x38] sm:$0xff] }
  0x1f   :  { %329 = vmatpush.msra.mxu1 %v128_v7  ;;  %664 = vmatmul.msk.f32.vlgmr.msra.gmra.mxu0 %vm152_vm0, %v132_v8  ;;  %v119_v23 = vld [vmem:[#allocation3 + $0x38] sm:$0xff]  ;;  %v140_v24 = vld [vmem:[#allocation6 + $0x40] sm:$0xff]  ;;  %v141_v26 = vld [vmem:[#allocation6 + $0x48] sm:$0xff] }
  0x20   :  { %680 = vmatmul.msk.f32.vlgmr.msra.gmra.mxu1 %vm152_vm0, %v112_v9  ;;  %v120_v25 = vld [vmem:[#allocation3 + $0x40] sm:$0xff]  ;;  %v121_v27 = vld [vmem:[#allocation3 + $0x48] sm:$0xff]  ;;  %v142_v28 = vld [vmem:[#allocation6 + $0x50] sm:$0xff] }
  0x21   :  { %v122_v29 = vld [vmem:[#allocation3 + $0x50] sm:$0xff]  ;;  %v143_v30 = vld [vmem:[#allocation6 + $0x58] sm:$0xff]  ;;  %v144_v33 = vld [vmem:[#allocation6 + $0x60] sm:$0xff] }
  0x22   :  { %v123_v31 = vld [vmem:[#allocation3 + $0x58] sm:$0xff]  ;;  %v124_v34 = vld [vmem:[#allocation3 + $0x60] sm:$0xff]  ;;  %v417_v35 = vld [vmem:[#allocation11 + $0x10] sm:$0xff] }
  0x23   :  { %v418_v32 = vld [vmem:[#allocation11 + $0x18] sm:$0xff]  ;;  %v416_v36 = vld [vmem:[#allocation11 + $0x8] sm:$0xff]  ;;  %v415_v37 = vld [vmem:[#allocation11] sm:$0xff] }
  0x24   :  { %483 = vmatpush.msra.mxu2 %v418_v32  ;;  %v145_v38 = vld [vmem:[#allocation6 + $0x68] sm:$0xff]  ;;  %v146_v40 = vld [vmem:[#allocation6 + $0x70] sm:$0xff]  ;;  %v147_v42 = vld [vmem:[#allocation6 + $0x78] sm:$0xff] }
  0x25   :  { %v125_v39 = vld [vmem:[#allocation3 + $0x68] sm:$0xff]  ;;  %v126_v41 = vld [vmem:[#allocation3 + $0x70] sm:$0xff]  ;;  %v127_v43 = vld [vmem:[#allocation3 + $0x78] sm:$0xff] }
  0x26   :  { %484 = vmatpush.msra.mxu2 %v417_v35  ;;  %v1018_v44 = vld [vmem:[%s1085_s4] ss:$0 sm:$0xff] }
  0x27   :  { %665 = vmatmul.msk.f32.gmra.mxu0 %vm152_vm0, %v133_v10 }
  0x28   :  { %681 = vmatmul.msk.f32.gmra.mxu1 %vm152_vm0, %v113_v11  ;;  %485 = vmatpush.msra.mxu2 %v416_v36 }
  0x2a   :  { %486 = vmatpush.msra.mxu2 %v415_v37 }
  0x2f   :  { %666 = vmatmul.msk.f32.gmra.mxu0 %vm152_vm0, %v134_v12 }
  0x30   :  { %682 = vmatmul.msk.f32.gmra.mxu1 %vm152_vm0, %v114_v13 }
  0x37   :  { %667 = vmatmul.msk.f32.gmra.mxu0 %vm152_vm0, %v135_v14 }
  0x38   :  { %683 = vmatmul.msk.f32.gmra.mxu1 %vm152_vm0, %v115_v15 }
  0x3f   :  { %668 = vmatmul.msk.f32.gmra.mxu0 %vm152_vm0, %v136_v16 }
  0x40   :  { %684 = vmatmul.msk.f32.gmra.mxu1 %vm152_vm0, %v116_v17 }
  0x47   :  { %669 = vmatmul.msk.f32.gmra.mxu0 %vm152_vm0, %v137_v18 }
  0x48   :  { %685 = vmatmul.msk.f32.gmra.mxu1 %vm152_vm0, %v117_v19 }
  0x4f   :  { %670 = vmatmul.msk.f32.gmra.mxu0 %vm152_vm0, %v138_v20 }
  0x50   :  { %686 = vmatmul.msk.f32.gmra.mxu1 %vm152_vm0, %v118_v21 }
  0x57   :  { %671 = vmatmul.msk.f32.gmra.mxu0 %vm152_vm0, %v139_v22 }
  0x58   :  { %687 = vmatmul.msk.f32.gmra.mxu1 %vm152_vm0, %v119_v23 }
  0x5f   :  { %672 = vmatmul.msk.f32.gmra.mxu0 %vm152_vm0, %v140_v24 }
  0x60   :  { %688 = vmatmul.msk.f32.gmra.mxu1 %vm152_vm0, %v120_v25 }
  0x67   :  { %673 = vmatmul.msk.f32.gmra.mxu0 %vm152_vm0, %v141_v26 }
  0x68   :  { %689 = vmatmul.msk.f32.gmra.mxu1 %vm152_vm0, %v121_v27 }
  0x6f   :  { %674 = vmatmul.msk.f32.gmra.mxu0 %vm152_vm0, %v142_v28 }
  0x70   :  { %690 = vmatmul.msk.f32.gmra.mxu1 %vm152_vm0, %v122_v29 }
  0x77   :  { %675 = vmatmul.msk.f32.gmra.mxu0 %vm152_vm0, %v143_v30 }
  0x78   :  { %691 = vmatmul.msk.f32.gmra.mxu1 %vm152_vm0, %v123_v31 }
  0x7f   :  { %676 = vmatmul.msk.f32.gmra.mxu0 %vm152_vm0, %v144_v33 }
  0x80   :  { %692 = vmatmul.msk.f32.gmra.mxu1 %vm152_vm0, %v124_v34 }
  0x87   :  { %677 = vmatmul.msk.f32.gmra.mxu0 %vm152_vm0, %v145_v38 }
  0x88   :  { %693 = vmatmul.msk.f32.gmra.mxu1 %vm152_vm0, %v125_v39 }
  0x8f   :  { %678 = vmatmul.msk.f32.gmra.mxu0 %vm152_vm0, %v146_v40 }
  0x90   :  { %694 = vmatmul.msk.f32.gmra.mxu1 %vm152_vm0, %v126_v41 }
  0x97   :  { %679 = vmatmul.msk.f32.gmra.mxu0 %vm152_vm0, %v147_v42 }
  0x98   :  { %695 = vmatmul.msk.f32.gmra.mxu1 %vm152_vm0, %v127_v43 }
  0x9c   :  { %v218_v45 = vpop.f32.mrf.mxu0 }
  0x9d   :  { %v331_v46 = vpop.f32.mrf.mxu1 }
  0x9e   :  { %v332_v47 = vadd.f32 %v331_v46, %v218_v45 }
  0xa0   :  { %v383_v48 = vadd.f32 %v1018_v44, %v332_v47 }
  0xa2   :  { %v399_v49 = vmax.f32 %v383_v48, 0.0 }
  0xa4   :  { %696 = vmatmul.msk.f32.vlgmr.msra.gmra.mxu2 %vm152_vm0, %v399_v49  ;;  %v221_v50 = vpop.f32.mrf.mxu0 }
  0xa5   :  { %v334_v51 = vpop.f32.mrf.mxu1 }
  0xa6   :  { %v335_v52 = vadd.f32 %v334_v51, %v221_v50 }
  0xa8   :  { %v384_v53 = vadd.f32 %v1018_v44, %v335_v52 }
  0xaa   :  { %v400_v54 = vmax.f32 %v384_v53, 0.0 }
  0xac   :  { %697 = vmatmul.msk.f32.gmra.mxu2 %vm152_vm0, %v400_v54  ;;  %v224_v55 = vpop.f32.mrf.mxu0 }
  0xad   :  { %v337_v56 = vpop.f32.mrf.mxu1 }
  0xae   :  { %v338_v57 = vadd.f32 %v337_v56, %v224_v55 }
  0xb0   :  { %v385_v58 = vadd.f32 %v1018_v44, %v338_v57 }
  0xb2   :  { %v401_v59 = vmax.f32 %v385_v58, 0.0 }
  0xb4   :  { %698 = vmatmul.msk.f32.gmra.mxu2 %vm152_vm0, %v401_v59  ;;  %v227_v60 = vpop.f32.mrf.mxu0 }
  0xb5   :  { %v340_v61 = vpop.f32.mrf.mxu1 }
  0xb6   :  { %v341_v62 = vadd.f32 %v340_v61, %v227_v60 }
  0xb8   :  { %v386_v63 = vadd.f32 %v1018_v44, %v341_v62 }
  0xba   :  { %v402_v0 = vmax.f32 %v386_v63, 0.0 }
  0xbc   :  { %699 = vmatmul.msk.f32.gmra.mxu2 %vm152_vm0, %v402_v0  ;;  %v230_v1 = vpop.f32.mrf.mxu0 }
  0xbd   :  { %v343_v2 = vpop.f32.mrf.mxu1 }
  0xbe   :  { %v344_v3 = vadd.f32 %v343_v2, %v230_v1 }
  0xc0   :  { %v387_v4 = vadd.f32 %v1018_v44, %v344_v3 }
  0xc2   :  { %v403_v5 = vmax.f32 %v387_v4, 0.0 }
  0xc4   :  { %700 = vmatmul.msk.f32.gmra.mxu2 %vm152_vm0, %v403_v5  ;;  %v233_v6 = vpop.f32.mrf.mxu0 }
  0xc5   :  { %v346_v7 = vpop.f32.mrf.mxu1 }
  0xc6   :  { %v347_v8 = vadd.f32 %v346_v7, %v233_v6 }
  0xc8   :  { %v388_v9 = vadd.f32 %v1018_v44, %v347_v8 }
  0xca   :  { %v404_v10 = vmax.f32 %v388_v9, 0.0 }
  0xcc   :  { %701 = vmatmul.msk.f32.gmra.mxu2 %vm152_vm0, %v404_v10  ;;  %v236_v11 = vpop.f32.mrf.mxu0 }
  0xcd   :  { %v349_v12 = vpop.f32.mrf.mxu1 }
  0xce   :  { %v350_v13 = vadd.f32 %v349_v12, %v236_v11 }
  0xd0   :  { %v389_v14 = vadd.f32 %v1018_v44, %v350_v13 }
  0xd2   :  { %v405_v15 = vmax.f32 %v389_v14, 0.0 }
  0xd4   :  { %702 = vmatmul.msk.f32.gmra.mxu2 %vm152_vm0, %v405_v15  ;;  %v239_v16 = vpop.f32.mrf.mxu0 }
  0xd5   :  { %v352_v17 = vpop.f32.mrf.mxu1 }
  0xd6   :  { %v353_v18 = vadd.f32 %v352_v17, %v239_v16 }
  0xd8   :  { %v390_v19 = vadd.f32 %v1018_v44, %v353_v18 }
  0xda   :  { %v406_v20 = vmax.f32 %v390_v19, 0.0 }
  0xdc   :  { %703 = vmatmul.msk.f32.gmra.mxu2 %vm152_vm0, %v406_v20  ;;  %v242_v21 = vpop.f32.mrf.mxu0 }
  0xdd   :  { %v355_v22 = vpop.f32.mrf.mxu1 }
  0xde   :  { %v356_v23 = vadd.f32 %v355_v22, %v242_v21 }
  0xe0   :  { %v391_v24 = vadd.f32 %v1018_v44, %v356_v23 }
  0xe2   :  { %v407_v25 = vmax.f32 %v391_v24, 0.0 }
  0xe4   :  { %704 = vmatmul.msk.f32.gmra.mxu2 %vm152_vm0, %v407_v25  ;;  %v245_v26 = vpop.f32.mrf.mxu0 }
  0xe5   :  { %v358_v27 = vpop.f32.mrf.mxu1 }
  0xe6   :  { %v359_v28 = vadd.f32 %v358_v27, %v245_v26 }
  0xe8   :  { %v392_v29 = vadd.f32 %v1018_v44, %v359_v28 }
  0xea   :  { %v408_v30 = vmax.f32 %v392_v29, 0.0 }
  0xec   :  { %705 = vmatmul.msk.f32.gmra.mxu2 %vm152_vm0, %v408_v30  ;;  %v248_v31 = vpop.f32.mrf.mxu0 }
  0xed   :  { %v361_v32 = vpop.f32.mrf.mxu1 }
  0xee   :  { %v362_v33 = vadd.f32 %v361_v32, %v248_v31 }
  0xf0   :  { %v393_v34 = vadd.f32 %v1018_v44, %v362_v33 }
  0xf2   :  { %v409_v35 = vmax.f32 %v393_v34, 0.0 }
  0xf4   :  { %706 = vmatmul.msk.f32.gmra.mxu2 %vm152_vm0, %v409_v35  ;;  %v251_v36 = vpop.f32.mrf.mxu0 }
  0xf5   :  { %v364_v37 = vpop.f32.mrf.mxu1 }
  0xf6   :  { %v365_v38 = vadd.f32 %v364_v37, %v251_v36 }
  0xf8   :  { %v394_v39 = vadd.f32 %v1018_v44, %v365_v38 }
  0xfa   :  { %v410_v40 = vmax.f32 %v394_v39, 0.0 }
  0xfc   :  { %707 = vmatmul.msk.f32.gmra.mxu2 %vm152_vm0, %v410_v40  ;;  %v254_v41 = vpop.f32.mrf.mxu0 }
  0xfd   :  { %v367_v42 = vpop.f32.mrf.mxu1 }
  0xfe   :  { %v368_v43 = vadd.f32 %v367_v42, %v254_v41 }
 0x100   :  { %v395_v45 = vadd.f32 %v1018_v44, %v368_v43 }
 0x102   :  { %v411_v46 = vmax.f32 %v395_v45, 0.0 }
 0x104   :  { %708 = vmatmul.msk.f32.gmra.mxu2 %vm152_vm0, %v411_v46  ;;  %v257_v47 = vpop.f32.mrf.mxu0 }
 0x105   :  { %v370_v48 = vpop.f32.mrf.mxu1 }
 0x106   :  { %v371_v49 = vadd.f32 %v370_v48, %v257_v47  ;;  %v552_v47 = vld [vmem:[%s1088_s7] sm:$0x1]  ;;  %v554_v48 = vstv %s1089_s8  ;;  %s902_s7 = smov [#allocation12]   ;;  %s652_s8 = sshll.u32 %s1090_s9, 4  ;;  %s653_s8 = int_to_ptr.hbm [resolvable:$true] %s652_s8 }
 0x107   :  { %s650_s16 = sshll.u32 %s902_s7, 4  ;;  %s651_s16 = int_to_ptr.vmem [resolvable:$true] %s650_s16 }
 0x108   :  { %v396_v50 = vadd.f32 %v1018_v44, %v371_v49 }
 0x10a   :  { %v412_v51 = vmax.f32 %v396_v50, 0.0 }
 0x10c   :  { %709 = vmatmul.msk.f32.gmra.mxu2 %vm152_vm0, %v412_v51  ;;  %v260_v52 = vpop.f32.mrf.mxu0 }
 0x10d   :  { %v373_v53 = vpop.f32.mrf.mxu1 }
 0x10e   :  { %v374_v54 = vadd.f32 %v373_v53, %v260_v52 }
 0x110   :  { %v397_v55 = vadd.f32 %v1018_v44, %v374_v54 }
 0x112   :  { %v413_v56 = vmax.f32 %v397_v55, 0.0 }
 0x114   :  { %710 = vmatmul.msk.f32.gmra.mxu2 %vm152_vm0, %v413_v56  ;;  %v263_v57 = vpop.f32.mrf.mxu0 }
 0x115   :  { %v376_v58 = vpop.f32.mrf.mxu1 }
 0x116   :  { %v377_v59 = vadd.f32 %v376_v58, %v263_v57 }
 0x118   :  { %v398_v60 = vadd.f32 %v1018_v44, %v377_v59  ;;  %v738_v44 = vld [vmem:[%s1087_s6] ss:$0 sm:$0xff] }
 0x11a   :  { %v414_v61 = vmax.f32 %v398_v60, 0.0 }
 0x11c   :  { %711 = vmatmul.msk.f32.gmra.mxu2 %vm152_vm0, %v414_v61 }
 0x127   :  { %v488_v62 = vpop.f32.mrf.mxu2 }
 0x128   :  { %v489_v43 = vadd.f32 %v738_v44, %v488_v62 }
 0x12a   :  { %v536_v46 = vmax.f32 %v489_v43, 0.0 }
 0x12f   :  { %v491_v63 = vpop.f32.mrf.mxu2 }
 0x130   :  { %v492_v41 = vadd.f32 %v738_v44, %v491_v63 }
 0x132   :  { %v537_v45 = vmax.f32 %v492_v41, 0.0 }
 0x137   :  { %v494_v0 = vpop.f32.mrf.mxu2 }
 0x138   :  { %v495_v39 = vadd.f32 %v738_v44, %v494_v0 }
 0x13a   :  { %v538_v42 = vmax.f32 %v495_v39, 0.0 }
 0x13f   :  { %v497_v1 = vpop.f32.mrf.mxu2 }
 0x140   :  { %v498_v37 = vadd.f32 %v738_v44, %v497_v1 }
 0x142   :  { %v539_v40 = vmax.f32 %v498_v37, 0.0 }
 0x147   :  { %v500_v2 = vpop.f32.mrf.mxu2 }
 0x148   :  { %v501_v35 = vadd.f32 %v738_v44, %v500_v2 }
 0x14a   :  { %v540_v38 = vmax.f32 %v501_v35, 0.0 }
 0x14f   :  { %v503_v3 = vpop.f32.mrf.mxu2 }
 0x150   :  { %v504_v33 = vadd.f32 %v738_v44, %v503_v3 }
 0x152   :  { %v541_v36 = vmax.f32 %v504_v33, 0.0 }
 0x157   :  { %v506_v4 = vpop.f32.mrf.mxu2 }
 0x158   :  { %v507_v31 = vadd.f32 %v738_v44, %v506_v4 }
 0x15a   :  { %v542_v34 = vmax.f32 %v507_v31, 0.0 }
 0x15f   :  { %v509_v5 = vpop.f32.mrf.mxu2 }
 0x160   :  { %v510_v29 = vadd.f32 %v738_v44, %v509_v5 }
 0x162   :  { %v543_v32 = vmax.f32 %v510_v29, 0.0 }
 0x167   :  { %v512_v6 = vpop.f32.mrf.mxu2 }
 0x168   :  { %v513_v27 = vadd.f32 %v738_v44, %v512_v6 }
 0x16a   :  { %v544_v30 = vmax.f32 %v513_v27, 0.0 }
 0x16f   :  { %v515_v7 = vpop.f32.mrf.mxu2 }
 0x170   :  { %v516_v25 = vadd.f32 %v738_v44, %v515_v7 }
 0x172   :  { %v545_v28 = vmax.f32 %v516_v25, 0.0 }
 0x177   :  { %v518_v8 = vpop.f32.mrf.mxu2 }
 0x178   :  { %v519_v23 = vadd.f32 %v738_v44, %v518_v8 }
 0x17a   :  { %v546_v26 = vmax.f32 %v519_v23, 0.0 }
 0x17f   :  { %v521_v9 = vpop.f32.mrf.mxu2 }
 0x180   :  { %v522_v21 = vadd.f32 %v738_v44, %v521_v9 }
 0x182   :  { %v547_v24 = vmax.f32 %v522_v21, 0.0 }
 0x187   :  { %v524_v10 = vpop.f32.mrf.mxu2 }
 0x188   :  { %v525_v19 = vadd.f32 %v738_v44, %v524_v10 }
 0x18a   :  { %v548_v22 = vmax.f32 %v525_v19, 0.0 }
 0x18f   :  { %v527_v11 = vpop.f32.mrf.mxu2 }
 0x190   :  { %v528_v17 = vadd.f32 %v738_v44, %v527_v11 }
 0x192   :  { %v549_v20 = vmax.f32 %v528_v17, 0.0 }
 0x197   :  { %v530_v12 = vpop.f32.mrf.mxu2 }
 0x198   :  { %v531_v15 = vadd.f32 %v738_v44, %v530_v12 }
 0x19a   :  { %v550_v18 = vmax.f32 %v531_v15, 0.0 }
 0x19f   :  { %v533_v13 = vpop.f32.mrf.mxu2 }
 0x1a0   :  { %v534_v14 = vadd.f32 %v738_v44, %v533_v13 }
 0x1a2   :  { %v551_v16 = vmax.f32 %v534_v14, 0.0 }
 0x1a4   :  { %712 = vmatpush.xpose.msk.msra.mxu3 %vm152_vm0, %v551_v16 }
 0x1a8   :  { %713 = vmatpush.xpose.msk.msra.mxu3 %vm152_vm0, %v550_v18 }
 0x1ac   :  { %714 = vmatpush.xpose.msk.msra.mxu3 %vm152_vm0, %v549_v20 }
 0x1b0   :  { %715 = vmatpush.xpose.msk.msra.mxu3 %vm152_vm0, %v548_v22 }
 0x1b4   :  { %716 = vmatpush.xpose.msk.msra.mxu3 %vm152_vm0, %v547_v24 }
 0x1b8   :  { %717 = vmatpush.xpose.msk.msra.mxu3 %vm152_vm0, %v546_v26 }
 0x1bc   :  { %718 = vmatpush.xpose.msk.msra.mxu3 %vm152_vm0, %v545_v28 }
 0x1c0   :  { %719 = vmatpush.xpose.msk.msra.mxu3 %vm152_vm0, %v544_v30 }
 0x1c4   :  { %720 = vmatpush.xpose.msk.msra.mxu3 %vm152_vm0, %v543_v32 }
 0x1c8   :  { %721 = vmatpush.xpose.msk.msra.mxu3 %vm152_vm0, %v542_v34 }
 0x1cc   :  { %722 = vmatpush.xpose.msk.msra.mxu3 %vm152_vm0, %v541_v36 }
 0x1d0   :  { %723 = vmatpush.xpose.msk.msra.mxu3 %vm152_vm0, %v540_v38 }
 0x1d4   :  { %724 = vmatpush.xpose.msk.msra.mxu3 %vm152_vm0, %v539_v40 }
 0x1d8   :  { %725 = vmatpush.xpose.msk.msra.mxu3 %vm152_vm0, %v538_v42 }
 0x1dc   :  { %726 = vmatpush.xpose.msk.msra.mxu3 %vm152_vm0, %v537_v45 }
 0x1e0   :  { %727 = vmatpush.xpose.msk.msra.mxu3 %vm152_vm0, %v536_v46 }
 0x1e3   :  { %728 = vmatmul.msk.f32.vlgmr.msra.gmra.mxu3 %vm152_vm0, %v552_v47 }
 0x266   :  { %v623_v49 = vpop.f32.mrf.mxu3 }
 0x267   :  { %v624_v50 = vadd.f32 %v623_v49, %v554_v48 }
 0x269   :  { %v626_v51 = vsub.f32 0.0, %v624_v50 }
 0x26b   :  { %v627_v52 = vmul.f32 1.442695, %v626_v51 }
 0x26d   :  { %739 = vpow2.f32 %v627_v52 }
 0x273   :  { %v740_v53 = vpop.eup %739 }
 0x274   :  { %v629_v54 = vadd.f32 1.0, %v740_v53 }
 0x276   :  { %741 = vrcp.f32 %v629_v54  ;;  %v641_v58 = vand.u32 2147483648, %v629_v54  ;;  %v639_v60 = vand.u32 2147483647, %v629_v54  ;;  %vm635_vm2 = vweird.f32 %v629_v54 }
 0x278   :  { %v642_v62 = vor.u32 1.1754944e-38, %v641_v58  ;;  %vm640_vm4 = vcmp.eq.f32.partialorder %v639_v60, 8.507059e+37 }
 0x27c   :  { %v742_v55 = vpop.eup %741 }
 0x27d   :  { %v631_v56 = vmul.f32 %v742_v55, %v629_v54  ;;  %vm636_vm1 = vweird.f32 %v742_v55 }
 0x27e   :  { %vm637_vm3 = vmor %vm635_vm2, %vm636_vm1 }
 0x27f   :  { %v632_v57 = vsub.f32 1.0, %v631_v56 }
 0x281   :  { %v633_v59 = vmul.f32 %v742_v55, %v632_v57 }
 0x283   :  { %v634_v61 = vadd.f32 %v742_v55, %v633_v59 }
 0x285   :  { %v638_v63 = vsel %vm637_vm3, %v742_v55, %v634_v61 }
 0x286   :  { %v643_v0 = vsel %vm640_vm4, %v642_v62, %v638_v63 }
 0x287   :  { %644 = vst [vmem:[#allocation12] sm:$0x1] %v643_v0 }
 0x288   :  { %655 = dma.vmem_to_hbm [thread:$0]  %s651_s16, 16, %s653_s8, [#allocation5]  }
 0x289   :  { %893 = dma.done.wait [#allocation5], 16  }
 0x28a   :  { %894 = vsyncadd [#allocation5], 4294967280 }
 0x28b   :  { %660 = vsyncpa [#allocation4], 1 }
 0x28c   :  { %661 = vsyncpa [#allocation7], 1 }
 0x28d   :  { %662 = vsyncpa [#allocation10], 1 }
 0x28e   :  { %663 = vsyncpa [#allocation5], 1 }

</bundles_post_ra>
